<compile_context>
chip_gen: v5e
topology: v5e:2x2
jax: 0.10.0
libtpu: 0.0.40
codegen_flags: <defaults>
</compile_context>

<pallas_src>
import jax
import jax.numpy as jnp
from jax.experimental import pallas as pl
from jax.experimental.pallas import tpu as pltpu


def _frozen_bn_kernel(x_ref, ss_ref, o_ref):
    """out = x * scale + shift, FMA in f32, broadcast per-row.

    x_ref:  (TM, TW) tile of the (N*C, H*W) slab (input dtype)
    ss_ref: (TM, 2)  f32, column 0 = scale, column 1 = shift
    o_ref:  (TM, TW) output tile (input dtype)
    """
    scale = ss_ref[:, 0:1]                      # (TM, 1) f32
    shift = ss_ref[:, 1:2]                      # (TM, 1) f32
    x = x_ref[...].astype(jnp.float32)
    o_ref[...] = (x * scale + shift).astype(o_ref.dtype)
    # TODO(synk): fuse a downstream ReLU / residual add here when the
    # call-site allows -- the only remaining >1.5x win for this HBM-bound op.


def _round_up(x, m):
    return ((x + m - 1) // m) * m


def _pick_col_tile(hw, max_cols):
    """Lane-dense column tile: full width if it fits, else a multiple of 128
    that (preferably) divides hw so the tail column block is never partial."""
    if hw <= max_cols:
        return hw
    t = (max_cols // 128) * 128
    while t >= 128:
        if hw % t == 0:
            return t
        t -= 128
    return (max_cols // 128) * 128  # fall back: masked tail block


def frozen_batch_norm_2d(x, weight, bias, running_mean, running_var, eps=1e-5,
                         target_block_bytes=4 * 1024 * 1024, max_cols=8192):
    """FrozenBatchNorm2d forward.  x: (N, C, H, W) -- NCHW, like the module."""
    N, C, H, W = x.shape
    out_dtype = x.dtype
    M = N * C
    HW = H * W

    # Per-channel affine, computed once in f32 (C-length, negligible cost),
    # kept in f32 end-to-end so the kernel FMA matches torchvision semantics.
    scale = (weight.astype(jnp.float32)
             * jax.lax.rsqrt(running_var.astype(jnp.float32) + jnp.float32(eps)))
    shift = bias.astype(jnp.float32) - running_mean.astype(jnp.float32) * scale

    # One row of the (N*C, H*W) slab per (n, c) plane; pack scale+shift into
    # a single (M, 2) f32 operand (one DMA stream, half the padded VMEM).
    ss = jnp.stack([jnp.tile(scale, N), jnp.tile(shift, N)], axis=1)
    ss = ss.astype(jnp.float32)                 # (M, 2)

    # Contiguous reshape of NCHW -- no data movement, no transpose.
    x2d = x.reshape(M, HW)
    # TODO(synk): for very small feature maps (H*W << 128, e.g. 7x7 stages),
    # fold g adjacent channel planes into the lane axis and expand scale/shift
    # in-kernel to keep stores lane-dense; 16x16 (=256 lanes) and larger maps
    # handled here are already dense.

    itemsize = jnp.dtype(out_dtype).itemsize
    sub_min = {1: 32, 2: 16}.get(itemsize, 8)   # dtype-aware min sublanes

    # Column tile (lane-dense), then row tile sized so the *padded* VMEM block
    # is ~target_block_bytes.
    tw = _pick_col_tile(HW, max_cols)
    lanes_padded = _round_up(tw, 128)
    tm_target = max(sub_min, target_block_bytes // (lanes_padded * itemsize))
    tm = min(_round_up(tm_target, sub_min), _round_up(M, sub_min))
    if tm >= M:
        tm = M                                   # full-dim block is always legal

    grid_i = pl.cdiv(M, tm)
    grid_j = pl.cdiv(HW, tw)

    # v7x has 2 TensorCores: if the whole (non-trivial) slab fits one block,
    # split rows so both cores get work.
    if (grid_i == 1 and grid_j == 1 and M >= 2 * sub_min
            and M * HW * itemsize >= (1 << 20)):
        tm = _round_up(pl.cdiv(M, 2), sub_min)
        grid_i = pl.cdiv(M, tm)

    # Explicit VMEM budget: 2-deep in + 2-deep out + packed scale/shift,
    # on padded block shapes, with headroom; raised above the v5e 16 MiB
    # scoped default and kept well under v7x's 64 MiB physical VMEM.
    x_blk_vmem = _round_up(tm, sub_min) * lanes_padded * itemsize
    ss_blk_vmem = _round_up(tm, 8) * 128 * 4
    needed = 4 * x_blk_vmem + 2 * ss_blk_vmem + (2 << 20)
    vmem_limit = int(min(max(needed, 16 << 20), 48 << 20))

    out2d = pl.pallas_call(
        _frozen_bn_kernel,
        out_shape=jax.ShapeDtypeStruct((M, HW), out_dtype),
        grid=(grid_i, grid_j),
        in_specs=[
            pl.BlockSpec((tm, tw), lambda i, j: (i, j)),   # x tile
            pl.BlockSpec((tm, 2), lambda i, j: (i, 0)),    # packed scale/shift
        ],
        out_specs=pl.BlockSpec((tm, tw), lambda i, j: (i, j)),
        compiler_params=pltpu.CompilerParams(
            dimension_semantics=("parallel", "parallel"),
            vmem_limit_bytes=vmem_limit),
    )(x2d, ss)

    return out2d.reshape(N, C, H, W)


if __name__ == "__main__":
    key = jax.random.PRNGKey(0)
    N, C, H, W = 2, 4, 16, 16
    eps = 1e-5

    # Deterministic inputs / buffers (module __init__ defaults, slightly
    # perturbed so the transform is non-trivial but reproducible).
    kx, kw, kb, km, kv = jax.random.split(key, 5)
    x = jax.random.normal(kx, (N, C, H, W), dtype=jnp.float32)
    weight = jnp.ones((C,), jnp.float32) + 0.1 * jax.random.normal(kw, (C,))
    bias = jnp.zeros((C,), jnp.float32) + 0.1 * jax.random.normal(kb, (C,))
    running_mean = jnp.zeros((C,), jnp.float32) + 0.1 * jax.random.normal(km, (C,))
    running_var = (jnp.ones((C,), jnp.float32) - eps
                   + 0.05 * jnp.abs(jax.random.normal(kv, (C,))))

    out = frozen_batch_norm_2d(x, weight, bias, running_mean, running_var, eps)
    out = jax.block_until_ready(out)

    # Pure-JAX reference (F.batch_norm with training=False semantics).
    scale_ref = weight * jax.lax.rsqrt(running_var + eps)
    shift_ref = bias - running_mean * scale_ref
    ref = x * scale_ref.reshape(1, C, 1, 1) + shift_ref.reshape(1, C, 1, 1)

    assert out.shape == x.shape and out.dtype == x.dtype
    assert jnp.allclose(out, ref, atol=1e-5, rtol=1e-5), "f32 mismatch vs reference"

    # bf16 activations: kernel still does the FMA in f32 (torchvision
    # FrozenBatchNorm2d promotion semantics), output stays bf16.
    xb = jnp.tile(x, (2, 1, 1, 1)).astype(jnp.bfloat16)     # N=4 -> M=16
    outb = jax.block_until_ready(
        frozen_batch_norm_2d(xb, weight, bias, running_mean, running_var, eps))
    refb = (xb.astype(jnp.float32) * scale_ref.reshape(1, C, 1, 1)
            + shift_ref.reshape(1, C, 1, 1))
    assert outb.shape == xb.shape and outb.dtype == jnp.bfloat16
    assert jnp.allclose(outb.astype(jnp.float32), refb, atol=2e-2, rtol=2e-2), \
        "bf16 mismatch vs reference"

    print("KERNEL_OK")
</pallas_src>

<mosaic_0001>
module attributes {stable_mosaic.version = 11 : i64} {
  func.func @_frozen_bn_kernel(%arg0: i32, %arg1: i32, %arg2: memref<8x256xf32, #tpu.memory_space<vmem>>, %arg3: memref<8x2xf32, #tpu.memory_space<vmem>>, %arg4: memref<8x256xf32, #tpu.memory_space<vmem>>) attributes {dimension_semantics = [#tpu.dimension_semantics<parallel>, #tpu.dimension_semantics<parallel>], iteration_bounds = array<i64: 1, 1>, scalar_prefetch = 0 : i64, scratch_operands = 0 : i64, tpu.core_type = #tpu.core_type<tc>, window_params = [{transform_indices = @transform_0, window_bounds = array<i64: 8, 256>}, {transform_indices = @transform_1, window_bounds = array<i64: 8, 2>}, {transform_indices = @transform_2, window_bounds = array<i64: 8, 256>}]} {
    %c0 = arith.constant 0 : index
    %c0_0 = arith.constant 0 : index
    %0 = vector.load %arg3[%c0, %c0_0] : memref<8x2xf32, #tpu.memory_space<vmem>>, vector<8x1xf32>
    %c0_1 = arith.constant 0 : index
    %c1 = arith.constant 1 : index
    %1 = vector.load %arg3[%c0_1, %c1] : memref<8x2xf32, #tpu.memory_space<vmem>>, vector<8x1xf32>
    %c0_2 = arith.constant 0 : index
    %c0_3 = arith.constant 0 : index
    %2 = vector.load %arg2[%c0_2, %c0_3] : memref<8x256xf32, #tpu.memory_space<vmem>>, vector<8x256xf32>
    %3 = vector.broadcast %0 : vector<8x1xf32> to vector<8x256xf32>
    %4 = arith.mulf %2, %3 : vector<8x256xf32>
    %5 = vector.broadcast %1 : vector<8x1xf32> to vector<8x256xf32>
    %6 = arith.addf %4, %5 : vector<8x256xf32>
    %c0_4 = arith.constant 0 : index
    %c0_5 = arith.constant 0 : index
    %7 = vector.load %arg4[%c0_4, %c0_5] : memref<8x256xf32, #tpu.memory_space<vmem>>, vector<8x256xf32>
    tpu.vector_store %arg4[%c0_4, %c0_5], %6 {strides = array<i32>} : memref<8x256xf32, #tpu.memory_space<vmem>>, vector<8x256xf32>,
    return
  }
  func.func @transform_0(%arg0: i32, %arg1: i32) -> (i32, i32) {
    %c0_i32 = arith.constant 0 : i32
    return %arg0, %arg1 : i32, i32
  }
  func.func @transform_1(%arg0: i32, %arg1: i32) -> (i32, i32) {
    %c0_i32 = arith.constant 0 : i32
    %c0_i32_0 = arith.constant 0 : i32
    return %arg0, %c0_i32 : i32, i32
  }
  func.func @transform_2(%arg0: i32, %arg1: i32) -> (i32, i32) {
    %c0_i32 = arith.constant 0 : i32
    return %arg0, %arg1 : i32, i32
  }
}

</mosaic_0001>

<bundles_post_ra>
// kernel: tpu_custom_call.1
= control target key start
LH: loop header
LB: loop body
LE: loop exit
PB: predicated region body
PF: predicated region fallthrough
CT: control target
= control target key end

     0   :  { %7 = vsyncpa [#allocation3], 0  ;;  %s147_s0 = inlined_call_operand.hbm [shape: f32[8,256], index: 0, kind: input, shape index: {}]   ;;  %s148_s1 = inlined_call_operand.vmem [shape: f32[8,2], index: 1, kind: input, shape index: {}]   ;;  %s149_s2 = inlined_call_operand.hbm [shape: f32[8,256], index: 2, kind: output, shape index: {}]  }
   0x1   :  { %8 = vsyncpa [#allocation4], 0  ;;  %s14_s11 = sshll.u32 %s147_s0, 4  ;;  %s119_s12 = smov [#allocation2]   ;;  %s15_s11 = int_to_ptr.hbm [resolvable:$true] %s14_s11 }
   0x2   :  { %s16_s13 = sshll.u32 %s119_s12, 4  ;;  %s17_s13 = int_to_ptr.vmem [resolvable:$true] %s16_s13 }
   0x3   :  { %19 = dma.hbm_to_vmem [thread:$0]  %s15_s11, 256, %s17_s13, [#allocation3]  }
   0x4   :  { %115 = dma.done.wait [#allocation3], 256  }
   0x5   :  { %116 = vsyncadd [#allocation3], 4294967040  ;;  %v120_v0 = vmov 0   ;;  %v26_v1 = vld [vmem:[%s148_s1] sm:$0xff]  ;;  %v121_v2 = vmov 1   ;;  %v28_v5 = vld [vmem:[#allocation2 + $0x8] sm:$0xff] }
   0x6   :  { %65 = vset.pattern.permute.xlu0 %v120_v0  ;;  %v27_v4 = vld [vmem:[#allocation2] sm:$0xff]  ;;  %s122_s0 = smov [#allocation5]   ;;  %s51_s19 = sshll.u32 %s149_s2, 4  ;;  %s52_s19 = int_to_ptr.hbm [resolvable:$true] %s51_s19 }
   0x7   :  { %31 = vperm.xlu0 %65, %v26_v1   ;;  %s49_s16 = sshll.u32 %s122_s0, 4  ;;  %s50_s16 = int_to_ptr.vmem [resolvable:$true] %s49_s16 }
   0xf   :  { %66 = vset.pattern.permute.xlu0 %v121_v2 }
  0x10   :  { %37 = vperm.xlu0 %66, %v26_v1  }
  0x79   :  { %v32_v3 = vpop.permute.xlu0 %31 }
  0x7a   :  { %v34_v6 = vmul.f32 %v32_v3, %v27_v4  ;;  %v35_v7 = vmul.f32 %v32_v3, %v28_v5 }
  0x82   :  { %v38_v8 = vpop.permute.xlu0 %37 }
  0x83   :  { %v40_v9 = vadd.f32 %v38_v8, %v34_v6  ;;  %v41_v10 = vadd.f32 %v38_v8, %v35_v7 }
  0x85   :  { %42 = vst [vmem:[#allocation5] sm:$0xff] %v40_v9 }
  0x86   :  { %43 = vst [vmem:[#allocation5 + $0x8] sm:$0xff] %v41_v10 }
  0x87   :  { %54 = dma.vmem_to_hbm [thread:$0]  %s50_s16, 256, %s52_s19, [#allocation4]  }
  0x88   :  { %117 = dma.done.wait [#allocation4], 256  }
  0x89   :  { %118 = vsyncadd [#allocation4], 4294967040 }
  0x8a   :  { %59 = vsyncpa [#allocation3], 1 }
  0x8b   :  { %60 = vsyncpa [#allocation4], 1 }

</bundles_post_ra>
